<compile_context>
chip_gen: v7x
topology: tpu7x:2x2x1
jax: 0.10.0
libtpu: 0.0.40
codegen_flags: <defaults>
</compile_context>

<pallas_src>
import functools

import jax
import jax.numpy as jnp
from jax.experimental import pallas as pl
from jax.experimental.pallas import tpu as pltpu


_LANE_CANDIDATES = (2048, 1024, 512, 256, 128)


def _num_tensorcores():
    """2 on v7x (megacore), 1 on v5e/v6e (and anything unknown)."""
    try:
        kind = jax.devices()[0].device_kind.lower()
    except Exception:
        return 1
    return 2 if "7" in kind else 1


def _hinge_kernel(pred_ref, tgt_ref, out_ref, acc_ref, *,
                  tile_n, acc_rows, n_rows, k_steps, needs_mask):
    k = pl.program_id(1)

    @pl.when(k == 0)
    def _():
        acc_ref[...] = jnp.zeros_like(acc_ref)

    # Elementwise hot path (pure VPU work): margin + clamp in f32.
    pred = pred_ref[...].astype(jnp.float32)
    tgt = tgt_ref[...].astype(jnp.float32)
    losses = jnp.maximum(1.0 - pred * tgt, 0.0)
    d = losses.shape[-1]

    def fold(vals):
        # Fold the (tile_n, d) tile into acc_rows independent per-vreg add
        # chains (pure vector adds, no XLU work, no scalar serial dependency).
        acc_ref[...] += vals.reshape(-1, acc_rows, d).sum(axis=0)

    if needs_mask:
        # Only the last logical block can be partial (or fully out of range
        # when the parallel axis padded the grid); gate the mask to it so all
        # full tiles keep the cheap unmasked path.
        blk = pl.program_id(0) * k_steps + k          # logical (unclamped) block index
        row0 = blk * tile_n
        is_tail = row0 + tile_n > n_rows

        @pl.when(row0 + tile_n <= n_rows)
        def _():
            fold(losses)

        @pl.when(is_tail)
        def _():
            rows = row0 + jax.lax.broadcasted_iota(jnp.int32, losses.shape, 0)
            fold(jnp.where(rows < n_rows, losses, 0.0))
    else:
        fold(losses)

    @pl.when(k == k_steps - 1)
    def _():
        out_ref[...] = acc_ref[...]


def hinge_loss(predictions, targets, *, block_rows=None,
               target_block_bytes=4 * 1024 * 1024,
               max_vmem_bytes=28 * 1024 * 1024):
    """Mean hinge loss via a Pallas TPU kernel (native-dtype inputs)."""
    assert predictions.shape == targets.shape, "predictions/targets shape mismatch"
    total = int(predictions.size)
    if total == 0:
        return jnp.float32(float("nan"))      # matches torch: mean of empty is nan

    itemsize = max(jnp.dtype(predictions.dtype).itemsize,
                   jnp.dtype(targets.dtype).itemsize)

    # --- Normalize to a lane-dense 2-D (rows, D) view. ----------------------
    tail_pair = None                          # <128-element remainder (rare)
    if predictions.ndim <= 1:
        p_flat = predictions.reshape(-1)
        t_flat = targets.reshape(-1)
        w = next((c for c in _LANE_CANDIDATES if total % c == 0), None)
        if w is not None:
            predictions, targets = p_flat.reshape(-1, w), t_flat.reshape(-1, w)
        else:
            main = (total // 128) * 128
            if main == 0:
                predictions, targets = p_flat.reshape(1, -1), t_flat.reshape(1, -1)
            else:
                tail_pair = (p_flat[main:], t_flat[main:])
                predictions = p_flat[:main].reshape(-1, 128)
                targets = t_flat[:main].reshape(-1, 128)
    else:
        last = predictions.shape[-1]
        predictions = predictions.reshape(-1, last)
        targets = targets.reshape(-1, last)
        if 64 * last * itemsize > 2 * target_block_bytes:
            # Very wide rows: split D so the kernel can still stream/pipeline.
            w = next((c for c in _LANE_CANDIDATES if last % c == 0), None)
            if w is not None:
                predictions = predictions.reshape(-1, w)
                targets = targets.reshape(-1, w)
            # TODO(synk): a huge last dim with no multiple-of-128 divisor keeps
            # a single very wide block (covered only by the larger vmem limit).

    N, D = predictions.shape

    # --- Row-tile size: ~target_block_bytes per input block, VMEM-capped. ---
    if block_rows is None:
        block_rows = target_block_bytes // max(1, D * itemsize)
    cap_rows = (max_vmem_bytes - (4 << 20)) // 4 // max(1, D * itemsize)
    block_rows = max(64, min(int(block_rows), max(64, cap_rows)))
    block_rows = (block_rows // 64) * 64
    tile_n = N if block_rows >= N else block_rows

    n_blocks = pl.cdiv(N, tile_n)
    # Leading parallel axis only where it pays off (2 TensorCores per chip).
    num_parallel = 2 if (_num_tensorcores() >= 2 and n_blocks >= 2) else 1
    k_steps = pl.cdiv(n_blocks, num_parallel)
    if tile_n % 32 == 0:
        acc_rows = 32                         # 4 independent (8, D) add chains
    elif tile_n % 8 == 0:
        acc_rows = 8
    else:
        acc_rows = tile_n                     # tiny full-extent block
    needs_mask = (N % tile_n != 0) or (num_parallel * k_steps != n_blocks)

    def in_index_map(p, k):
        blk = p * k_steps + k
        # Clamp fully-out-of-range blocks (their contribution is masked to 0).
        return (jnp.minimum(blk, n_blocks - 1), 0)

    kernel = functools.partial(
        _hinge_kernel,
        tile_n=tile_n, acc_rows=acc_rows, n_rows=N,
        k_steps=k_steps, needs_mask=needs_mask)

    # Explicit VMEM budget: 2 inputs x 2 pipeline buffers x block + out + acc.
    block_bytes = tile_n * D * itemsize
    acc_bytes = acc_rows * D * 4
    vmem_need = 2 * 2 * block_bytes + 3 * acc_bytes + (2 << 20)
    vmem_limit = int(min(vmem_need, 64 << 20))

    cost = pl.CostEstimate(
        flops=3 * total,
        transcendentals=0,
        bytes_accessed=(total * (jnp.dtype(predictions.dtype).itemsize
                                 + jnp.dtype(targets.dtype).itemsize)
                        + num_parallel * acc_bytes))

    partial_sums = pl.pallas_call(
        kernel,
        out_shape=jax.ShapeDtypeStruct((num_parallel * acc_rows, D), jnp.float32),
        grid_spec=pltpu.PrefetchScalarGridSpec(
            num_scalar_prefetch=0,
            grid=(num_parallel, k_steps),
            in_specs=[
                pl.BlockSpec((tile_n, D), in_index_map),
                pl.BlockSpec((tile_n, D), in_index_map),
            ],
            out_specs=pl.BlockSpec((acc_rows, D), lambda p, k: (p, 0)),
            scratch_shapes=[pltpu.VMEM((acc_rows, D), jnp.float32)],
        ),
        compiler_params=pltpu.CompilerParams(
            dimension_semantics=("parallel", "arbitrary"),
            vmem_limit_bytes=vmem_limit,
        ),
        cost_estimate=cost,
    )(predictions, targets)

    # Tiny finishing reduction + mean over the ORIGINAL element count.
    loss_sum = jnp.sum(partial_sums)
    if tail_pair is not None:
        tp, tt = tail_pair
        loss_sum = loss_sum + jnp.sum(jnp.maximum(
            1.0 - tp.astype(jnp.float32) * tt.astype(jnp.float32), 0.0))
    return loss_sum / total


def hinge_loss_ref(predictions, targets):
    p = predictions.astype(jnp.float32)
    t = targets.astype(jnp.float32)
    return jnp.mean(jnp.maximum(1.0 - p * t, 0.0))


if __name__ == "__main__":
    key = jax.random.PRNGKey(0)

    def make_inputs(k, shape, dtype):
        kp, kt = jax.random.split(k)
        preds = jax.random.normal(kp, shape, dtype=jnp.float32).astype(dtype)
        tgts = jnp.where(jax.random.bernoulli(kt, 0.5, shape), 1.0, -1.0).astype(dtype)
        return preds, tgts

    k1, k2, k3, k4 = jax.random.split(key, 4)

    # 1) Small default case (single full-extent block, no mask).
    p1, t1 = make_inputs(k1, (256, 128), jnp.float32)
    out1 = jax.block_until_ready(hinge_loss(p1, t1))
    ref1 = hinge_loss_ref(p1, t1)
    assert jnp.allclose(out1, ref1, rtol=1e-5, atol=1e-5), (out1, ref1)

    # 2) Non-divisible N: multi-block grid + pl.when-gated tail mask.
    p2, t2 = make_inputs(k2, (200, 128), jnp.float32)
    out2 = jax.block_until_ready(hinge_loss(p2, t2, block_rows=64))
    ref2 = hinge_loss_ref(p2, t2)
    assert jnp.allclose(out2, ref2, rtol=1e-5, atol=1e-5), (out2, ref2)

    # 3) bf16 inputs consumed natively; odd block count (pads only on v7x).
    p3, t3 = make_inputs(k3, (192, 128), jnp.bfloat16)
    out3 = jax.block_until_ready(hinge_loss(p3, t3, block_rows=64))
    ref3 = hinge_loss_ref(p3, t3)
    assert jnp.allclose(out3, ref3, rtol=1e-4, atol=1e-4), (out3, ref3)

    # 4) 1-D input whose length is not a multiple of 128 (refold + jnp tail).
    p4, t4 = make_inputs(k4, (1000,), jnp.float32)
    out4 = jax.block_until_ready(hinge_loss(p4, t4))
    ref4 = hinge_loss_ref(p4, t4)
    assert jnp.allclose(out4, ref4, rtol=1e-5, atol=1e-5), (out4, ref4)

    print("KERNEL_OK")
</pallas_src>

<mosaic_0001>
module attributes {stable_mosaic.version = 11 : i64} {
  func.func @_hinge_kernel(%arg0: i32, %arg1: i32, %arg2: memref<256x128xf32, #tpu.memory_space<vmem>>, %arg3: memref<256x128xf32, #tpu.memory_space<vmem>>, %arg4: memref<32x128xf32, #tpu.memory_space<vmem>>, %arg5: memref<32x128xf32, #tpu.memory_space<vmem>>) attributes {dimension_semantics = [#tpu.dimension_semantics<parallel>, #tpu.dimension_semantics<arbitrary>], iteration_bounds = array<i64: 1, 1>, scalar_prefetch = 0 : i64, scratch_operands = 1 : i64, tpu.core_type = #tpu.core_type<tc>, window_params = [{transform_indices = @transform_0, window_bounds = array<i64: 256, 128>}, {transform_indices = @transform_1, window_bounds = array<i64: 256, 128>}, {transform_indices = @transform_2, window_bounds = array<i64: 32, 128>}]} {
    %c0_i32 = arith.constant 0 : i32
    %0 = arith.cmpi eq, %arg1, %c0_i32 : i32
    %1 = arith.extui %0 : i1 to i32
    %c0_i32_0 = arith.constant 0 : i32
    %2 = arith.cmpi ne, %1, %c0_i32_0 : i32
    scf.if %2 {
      %cst_12 = arith.constant 0.000000e+00 : f32
      %18 = vector.broadcast %cst_12 : f32 to vector<32x128xf32>
      %c0_13 = arith.constant 0 : index
      %c0_14 = arith.constant 0 : index
      %19 = vector.load %arg5[%c0_13, %c0_14] : memref<32x128xf32, #tpu.memory_space<vmem>>, vector<32x128xf32>
      tpu.vector_store %arg5[%c0_13, %c0_14], %18 {strides = array<i32>} : memref<32x128xf32, #tpu.memory_space<vmem>>, vector<32x128xf32>,
    } else {
    }
    %c0 = arith.constant 0 : index
    %c0_1 = arith.constant 0 : index
    %3 = vector.load %arg2[%c0, %c0_1] : memref<256x128xf32, #tpu.memory_space<vmem>>, vector<256x128xf32>
    %c0_2 = arith.constant 0 : index
    %c0_3 = arith.constant 0 : index
    %4 = vector.load %arg3[%c0_2, %c0_3] : memref<256x128xf32, #tpu.memory_space<vmem>>, vector<256x128xf32>
    %5 = arith.mulf %3, %4 : vector<256x128xf32>
    %cst = arith.constant 1.000000e+00 : f32
    %6 = vector.broadcast %cst : f32 to vector<256x128xf32>
    %7 = arith.subf %6, %5 : vector<256x128xf32>
    %cst_4 = arith.constant 0.000000e+00 : f32
    %8 = vector.broadcast %cst_4 : f32 to vector<256x128xf32>
    %9 = arith.maximumf %7, %8 : vector<256x128xf32>
    %c0_5 = arith.constant 0 : index
    %c0_6 = arith.constant 0 : index
    %10 = vector.load %arg5[%c0_5, %c0_6] : memref<32x128xf32, #tpu.memory_space<vmem>>, vector<32x128xf32>
    %11 = vector.shape_cast %9 : vector<256x128xf32> to vector<8x32x128xf32>
    %cst_7 = arith.constant dense<0.000000e+00> : vector<32x128xf32>
    %12 = vector.multi_reduction <add>, %11, %cst_7 [0] : vector<8x32x128xf32> to vector<32x128xf32>
    %13 = arith.addf %10, %12 : vector<32x128xf32>
    %c0_8 = arith.constant 0 : index
    %c0_9 = arith.constant 0 : index
    %14 = vector.load %arg5[%c0_8, %c0_9] : memref<32x128xf32, #tpu.memory_space<vmem>>, vector<32x128xf32>
    tpu.vector_store %arg5[%c0_8, %c0_9], %13 {strides = array<i32>} : memref<32x128xf32, #tpu.memory_space<vmem>>, vector<32x128xf32>,
    %c0_i32_10 = arith.constant 0 : i32
    %15 = arith.cmpi eq, %arg1, %c0_i32_10 : i32
    %16 = arith.extui %15 : i1 to i32
    %c0_i32_11 = arith.constant 0 : i32
    %17 = arith.cmpi ne, %16, %c0_i32_11 : i32
    scf.if %17 {
      %c0_12 = arith.constant 0 : index
      %c0_13 = arith.constant 0 : index
      %18 = vector.load %arg5[%c0_12, %c0_13] : memref<32x128xf32, #tpu.memory_space<vmem>>, vector<32x128xf32>
      %c0_14 = arith.constant 0 : index
      %c0_15 = arith.constant 0 : index
      %19 = vector.load %arg4[%c0_14, %c0_15] : memref<32x128xf32, #tpu.memory_space<vmem>>, vector<32x128xf32>
      tpu.vector_store %arg4[%c0_14, %c0_15], %18 {strides = array<i32>} : memref<32x128xf32, #tpu.memory_space<vmem>>, vector<32x128xf32>,
    } else {
    }
    return
  }
  func.func @transform_0(%arg0: i32, %arg1: i32) -> (i32, i32) {
    %c1_i32 = arith.constant 1 : i32
    %0 = arith.muli %arg0, %c1_i32 : i32
    %1 = arith.addi %0, %arg1 : i32
    %c0_i32 = arith.constant 0 : i32
    %2 = arith.minsi %1, %c0_i32 : i32
    %c0_i32_0 = arith.constant 0 : i32
    %c0_i32_1 = arith.constant 0 : i32
    return %2, %c0_i32_0 : i32, i32
  }
  func.func @transform_1(%arg0: i32, %arg1: i32) -> (i32, i32) {
    %c1_i32 = arith.constant 1 : i32
    %0 = arith.muli %arg0, %c1_i32 : i32
    %1 = arith.addi %0, %arg1 : i32
    %c0_i32 = arith.constant 0 : i32
    %2 = arith.minsi %1, %c0_i32 : i32
    %c0_i32_0 = arith.constant 0 : i32
    %c0_i32_1 = arith.constant 0 : i32
    return %2, %c0_i32_0 : i32, i32
  }
  func.func @transform_2(%arg0: i32, %arg1: i32) -> (i32, i32) {
    %c0_i32 = arith.constant 0 : i32
    %c0_i32_0 = arith.constant 0 : i32
    return %arg0, %c0_i32 : i32, i32
  }
}

</mosaic_0001>

<bundles_post_ra>
// kernel: tpu_custom_call.1
= control target key start
LH: loop header
LB: loop body
LE: loop exit
PB: predicated region body
PF: predicated region fallthrough
CT: control target
= control target key end

     0   :  { %7 = vsyncpa [#allocation4], 0  ;;  %s446_s0 = inlined_call_operand.hbm [shape: f32[256,128], index: 0, kind: input, shape index: {}]   ;;  %s447_s1 = inlined_call_operand.hbm [shape: f32[256,128], index: 1, kind: input, shape index: {}]   ;;  %s448_s2 = inlined_call_operand.hbm [shape: f32[32,128], index: 2, kind: output, shape index: {}]  }
   0x1   :  { %8 = vsyncpa [#allocation7], 0 }
   0x2   :  { %9 = vsyncpa [#allocation5], 0  ;;  %s378_s9 = smov [#allocation3]   ;;  %s306_s13 = scalar_lea.hbm %s446_s0, 4096 }
   0x3   :  { %s21_s10 = sshll.u32 %s378_s9, 4  ;;  %p307_p0 = scmp.ne.s32.totalorder %s446_s0, %s306_s13  ;;  %s22_s10 = int_to_ptr.vmem [resolvable:$true] %s21_s10 }
   0x4   :  { %p310_p1 = scmp.lt.u32.totalorder %s306_s13, %s446_s0 }
   0x6   :  { %p312_p2 = pnand %p310_p1, %p307_p0 }
   0x8   :  { %315 = shalt.err (!%p312_p2)
}
   0x9   :  { %s316_s18 = scalar_lea.vmem %s22_s10, 4096  ;;  %p321_p4 = scmp.lt.s32.totalorder %s22_s10, %s22_s10 }
   0xa   :  { %p317_p3 = scmp.ne.s32.totalorder %s22_s10, %s316_s18  ;;  %p322_p5 = scmp.lt.s32.totalorder %s316_s18, %s316_s18 }
   0xc   :  { %p323_p6 = por %p322_p5, %p321_p4 }
   0xe   :  { %p324_p7 = pnand %p323_p6, %p317_p3 }
  0x10   :  { %327 = shalt.err (!%p324_p7)
}
  0x11   :  { %s379_s19 = smov 128   ;;  %s380_s20 = smov 8  }
  0x12   :  { %27 = dma.hbm_to_vmem [thread:$0]  %s446_s0, 4096, %s22_s10, [#allocation4], %s379_s19, %s379_s19, %s380_s20  }
  0x13   :  { %s381_s23 = smov [#allocation6]   ;;  %s328_s27 = scalar_lea.hbm %s447_s1, 4096 }
  0x14   :  { %s39_s24 = sshll.u32 %s381_s23, 4  ;;  %p329_p8 = scmp.ne.s32.totalorder %s447_s1, %s328_s27  ;;  %s40_s24 = int_to_ptr.vmem [resolvable:$true] %s39_s24 }
  0x15   :  { %p332_p9 = scmp.lt.u32.totalorder %s328_s27, %s447_s1 }
  0x17   :  { %p334_p10 = pnand %p332_p9, %p329_p8 }
  0x19   :  { %337 = shalt.err (!%p334_p10)
}
  0x1a   :  { %s338_s4 = scalar_lea.vmem %s40_s24, 4096  ;;  %p343_p12 = scmp.lt.s32.totalorder %s40_s24, %s40_s24 }
  0x1b   :  { %p339_p11 = scmp.ne.s32.totalorder %s40_s24, %s338_s4  ;;  %p344_p13 = scmp.lt.s32.totalorder %s338_s4, %s338_s4 }
  0x1d   :  { %p345_p0 = por %p344_p13, %p343_p12 }
  0x1f   :  { %p346_p1 = pnand %p345_p0, %p339_p11 }
  0x21   :  { %349 = shalt.err (!%p346_p1)
}
  0x22   :  { %45 = dma.hbm_to_vmem [thread:$0]  %s447_s1, 4096, %s40_s24, [#allocation7], %s379_s19, %s379_s19, %s380_s20  }
  0x23   :  { %372 = dma.done.wait [#allocation4], 4096  }
  0x24   :  { %373 = vsyncadd [#allocation4], 4294963200 }
  0x25   :  { %374 = dma.done.wait [#allocation7], 4096  }
  0x26   :  { %375 = vsyncadd [#allocation7], 4294963200  ;;  %v68_v0 = vld [vmem:[#allocation3] sm:$0xff]  ;;  %v69_v24 = vld [vmem:[#allocation3 + $0x8] sm:$0xff]  ;;  %s382_s1 = smov [#allocation8]  }
  0x27   :  { %v72_v1 = vld [vmem:[#allocation3 + $0x20] sm:$0xff]  ;;  %v73_v29 = vld [vmem:[#allocation3 + $0x28] sm:$0xff]  ;;  %s284_s6 = sshll.u32 %s382_s1, 4  ;;  %s285_s6 = int_to_ptr.vmem [resolvable:$true] %s284_s6 }
  0x28   :  { %v76_v2 = vld [vmem:[#allocation3 + $0x40] sm:$0xff]  ;;  %v77_v30 = vld [vmem:[#allocation3 + $0x48] sm:$0xff]  ;;  %s350_s7 = scalar_lea.vmem %s285_s6, 512  ;;  %p355_p3 = scmp.lt.s32.totalorder %s285_s6, %s285_s6 }
  0x29   :  { %v80_v3 = vld [vmem:[#allocation3 + $0x60] sm:$0xff]  ;;  %v81_v31 = vld [vmem:[#allocation3 + $0x68] sm:$0xff]  ;;  %p351_p2 = scmp.ne.s32.totalorder %s285_s6, %s350_s7  ;;  %p356_p4 = scmp.lt.s32.totalorder %s350_s7, %s350_s7 }
  0x2a   :  { %v84_v4 = vld [vmem:[#allocation3 + $0x80] sm:$0xff]  ;;  %v85_v36 = vld [vmem:[#allocation3 + $0x88] sm:$0xff] }
  0x2b   :  { %v88_v5 = vld [vmem:[#allocation3 + $0xa0] sm:$0xff]  ;;  %v89_v37 = vld [vmem:[#allocation3 + $0xa8] sm:$0xff]  ;;  %p357_p5 = por %p356_p4, %p355_p3 }
  0x2c   :  { %v92_v6 = vld [vmem:[#allocation3 + $0xc0] sm:$0xff]  ;;  %v93_v41 = vld [vmem:[#allocation3 + $0xc8] sm:$0xff] }
  0x2d   :  { %v96_v7 = vld [vmem:[#allocation3 + $0xe0] sm:$0xff]  ;;  %v97_v42 = vld [vmem:[#allocation3 + $0xe8] sm:$0xff]  ;;  %p358_p6 = pnand %p357_p5, %p351_p2 }
  0x2e   :  { %v100_v8 = vld [vmem:[#allocation6] sm:$0xff]  ;;  %v101_v43 = vld [vmem:[#allocation6 + $0x8] sm:$0xff] }
  0x2f   :  { %v104_v9 = vld [vmem:[#allocation6 + $0x20] sm:$0xff]  ;;  %v132_v12 = vmul.f32 %v100_v8, %v68_v0  ;;  %v105_v47 = vld [vmem:[#allocation6 + $0x28] sm:$0xff]  ;;  %v133_v50 = vmul.f32 %v101_v43, %v69_v24  ;;  %v114_v24 = vld [vmem:[#allocation6 + $0x70] sm:$0xff] }
  0x30   :  { %v108_v10 = vld [vmem:[#allocation6 + $0x40] sm:$0xff]  ;;  %v136_v16 = vmul.f32 %v104_v9, %v72_v1  ;;  %v109_v48 = vld [vmem:[#allocation6 + $0x48] sm:$0xff]  ;;  %v137_v56 = vmul.f32 %v105_v47, %v73_v29  ;;  %v82_v9 = vld [vmem:[#allocation3 + $0x70] sm:$0xff] }
  0x31   :  { %v112_v11 = vld [vmem:[#allocation6 + $0x60] sm:$0xff]  ;;  %v140_v17 = vmul.f32 %v108_v10, %v76_v2  ;;  %v164_v23 = vsub.f32 1.0, %v132_v12  ;;  %v113_v49 = vld [vmem:[#allocation6 + $0x68] sm:$0xff]  ;;  %v141_v57 = vmul.f32 %v109_v48, %v77_v30  ;;  %v165_v1 = vsub.f32 1.0, %v133_v50  ;;  %v86_v10 = vld [vmem:[#allocation3 + $0x90] sm:$0xff] }
  0x32   :  { %v116_v13 = vld [vmem:[#allocation6 + $0x80] sm:$0xff]  ;;  %v144_v18 = vmul.f32 %v112_v11, %v80_v3  ;;  %v168_v26 = vsub.f32 1.0, %v136_v16  ;;  %v117_v53 = vld [vmem:[#allocation6 + $0x88] sm:$0xff]  ;;  %v145_v59 = vmul.f32 %v113_v49, %v81_v31  ;;  %v169_v2 = vsub.f32 1.0, %v137_v56  ;;  %v70_v3 = vld [vmem:[#allocation3 + $0x10] sm:$0xff] }
  0x33   :  { %v120_v14 = vld [vmem:[#allocation6 + $0xa0] sm:$0xff]  ;;  %v148_v20 = vmul.f32 %v116_v13, %v84_v4  ;;  %v172_v27 = vsub.f32 1.0, %v140_v17  ;;  %v196_v35 = vmax.f32 %v164_v23, 0.0  ;;  %v121_v54 = vld [vmem:[#allocation6 + $0xa8] sm:$0xff]  ;;  %v149_v60 = vmul.f32 %v117_v53, %v85_v36  ;;  %v74_v4 = vld [vmem:[#allocation3 + $0x30] sm:$0xff] }
  0x34   :  { %v124_v15 = vld [vmem:[#allocation6 + $0xc0] sm:$0xff]  ;;  %v152_v21 = vmul.f32 %v120_v14, %v88_v5  ;;  %v176_v28 = vsub.f32 1.0, %v144_v18  ;;  %v200_v39 = vmax.f32 %v168_v26, 0.0  ;;  %v125_v55 = vld [vmem:[#allocation6 + $0xc8] sm:$0xff]  ;;  %v153_v61 = vmul.f32 %v121_v54, %v89_v37  ;;  %v78_v5 = vld [vmem:[#allocation3 + $0x50] sm:$0xff] }
  0x35   :  { %v128_v19 = vld [vmem:[#allocation6 + $0xe0] sm:$0xff]  ;;  %v156_v22 = vmul.f32 %v124_v15, %v92_v6  ;;  %v180_v32 = vsub.f32 1.0, %v148_v20  ;;  %v204_v40 = vmax.f32 %v172_v27, 0.0  ;;  %v129_v58 = vld [vmem:[#allocation6 + $0xe8] sm:$0xff]  ;;  %v157_v62 = vmul.f32 %v125_v55, %v93_v41  ;;  %v90_v11 = vld [vmem:[#allocation3 + $0xb0] sm:$0xff] }
  0x36   :  { %v160_v25 = vmul.f32 %v128_v19, %v96_v7  ;;  %v184_v33 = vsub.f32 1.0, %v152_v21  ;;  %v208_v44 = vmax.f32 %v176_v28, 0.0  ;;  %v232_v52 = vadd.f32 %v200_v39, %v196_v35  ;;  %v94_v16 = vld [vmem:[#allocation3 + $0xd0] sm:$0xff]  ;;  %v71_v50 = vld [vmem:[#allocation3 + $0x18] sm:$0xff] }
  0x37   :  { %v188_v34 = vsub.f32 1.0, %v156_v22  ;;  %v212_v45 = vmax.f32 %v180_v32, 0.0  ;;  %v428_v0 = vmul.f32 %v129_v58, %v97_v42  ;;  %v173_v6 = vsub.f32 1.0, %v141_v57  ;;  %v102_v17 = vld [vmem:[#allocation6 + $0x10] sm:$0xff]  ;;  %v75_v55 = vld [vmem:[#allocation3 + $0x38] sm:$0xff] }
  0x38   :  { %v192_v38 = vsub.f32 1.0, %v160_v25  ;;  %v216_v46 = vmax.f32 %v184_v33, 0.0  ;;  %v233_v63 = vadd.f32 %v232_v52, %v204_v40  ;;  %v177_v7 = vsub.f32 1.0, %v145_v59  ;;  %v106_v18 = vld [vmem:[#allocation6 + $0x30] sm:$0xff]  ;;  %v79_v56 = vld [vmem:[#allocation3 + $0x58] sm:$0xff] }
  0x39   :  { %v220_v51 = vmax.f32 %v188_v34, 0.0  ;;  %v181_v8 = vsub.f32 1.0, %v149_v60  ;;  %v185_v14 = vsub.f32 1.0, %v153_v61  ;;  %v197_v15 = vmax.f32 %v165_v1, 0.0  ;;  %v98_v22 = vld [vmem:[#allocation3 + $0xf0] sm:$0xff]  ;;  %v83_v57 = vld [vmem:[#allocation3 + $0x78] sm:$0xff] }
  0x3a   :  { %v224_v12 = vmax.f32 %v192_v38, 0.0  ;;  %v234_v13 = vadd.f32 %v233_v63, %v208_v44  ;;  %v189_v19 = vsub.f32 1.0, %v157_v62  ;;  %v201_v20 = vmax.f32 %v169_v2, 0.0  ;;  %v110_v23 = vld [vmem:[#allocation6 + $0x50] sm:$0xff]  ;;  %v103_v61 = vld [vmem:[#allocation6 + $0x18] sm:$0xff] }
  0x3b   :  { %v205_v21 = vmax.f32 %v173_v6, 0.0  ;;  %v193_v26 = vsub.f32 1.0, %v428_v0  ;;  %v209_v27 = vmax.f32 %v177_v7, 0.0  ;;  %v213_v28 = vmax.f32 %v181_v8, 0.0  ;;  %v118_v29 = vld [vmem:[#allocation6 + $0x90] sm:$0xff]  ;;  %v107_v62 = vld [vmem:[#allocation6 + $0x38] sm:$0xff] }
  0x3c   :  { %v235_v25 = vadd.f32 %v234_v13, %v212_v45  ;;  %v122_v30 = vld [vmem:[#allocation6 + $0xb0] sm:$0xff]  ;;  %v239_v32 = vadd.f32 %v201_v20, %v197_v15  ;;  %v134_v34 = vmul.f32 %v102_v17, %v70_v3  ;;  %v138_v35 = vmul.f32 %v106_v18, %v74_v4  ;;  %v111_v63 = vld [vmem:[#allocation6 + $0x58] sm:$0xff] }
  0x3d   :  { %v126_v31 = vld [vmem:[#allocation6 + $0xd0] sm:$0xff]  ;;  %v142_v36 = vmul.f32 %v110_v23, %v78_v5  ;;  %v146_v38 = vmul.f32 %v114_v24, %v82_v9  ;;  %v150_v39 = vmul.f32 %v118_v29, %v86_v10  ;;  %v154_v40 = vmul.f32 %v122_v30, %v90_v11  ;;  %v87_v3 = vld [vmem:[#allocation3 + $0x98] sm:$0xff] }
  0x3e   :  { %v130_v33 = vld [vmem:[#allocation6 + $0xf0] sm:$0xff]  ;;  %v236_v37 = vadd.f32 %v235_v25, %v216_v46  ;;  %v240_v41 = vadd.f32 %v239_v32, %v205_v21  ;;  %v158_v42 = vmul.f32 %v126_v31, %v94_v16  ;;  %v166_v44 = vsub.f32 1.0, %v134_v34  ;;  %v115_v4 = vld [vmem:[#allocation6 + $0x78] sm:$0xff] }
  0x3f   :  { %v162_v43 = vmul.f32 %v130_v33, %v98_v22  ;;  %v170_v47 = vsub.f32 1.0, %v138_v35  ;;  %v174_v48 = vsub.f32 1.0, %v142_v36  ;;  %v178_v49 = vsub.f32 1.0, %v146_v38  ;;  %v119_v5 = vld [vmem:[#allocation6 + $0x98] sm:$0xff] }
  0x40   :  { %v237_v45 = vadd.f32 %v236_v37, %v220_v51  ;;  %v217_v52 = vmax.f32 %v185_v14, 0.0  ;;  %v221_v53 = vmax.f32 %v189_v19, 0.0  ;;  %v241_v54 = vadd.f32 %v240_v41, %v209_v27  ;;  %v91_v10 = vld [vmem:[#allocation3 + $0xb8] sm:$0xff] }
  0x41   :  { %v182_v46 = vsub.f32 1.0, %v150_v39  ;;  %v198_v59 = vmax.f32 %v166_v44, 0.0  ;;  %v202_v60 = vmax.f32 %v170_v47, 0.0  ;;  %v225_v0 = vmax.f32 %v193_v26, 0.0  ;;  %v123_v11 = vld [vmem:[#allocation6 + $0xb8] sm:$0xff] }
  0x42   :  { %v238_v58 = vadd.f32 %v237_v45, %v224_v12  ;;  %v242_v1 = vadd.f32 %v241_v54, %v213_v28  ;;  %v186_v51 = vsub.f32 1.0, %v154_v40  ;;  %v206_v2 = vmax.f32 %v174_v48, 0.0  ;;  %v95_v18 = vld [vmem:[#allocation3 + $0xd8] sm:$0xff] }
  0x43   :  { %v190_v6 = vsub.f32 1.0, %v158_v42  ;;  %v194_v7 = vsub.f32 1.0, %v162_v43  ;;  %v210_v8 = vmax.f32 %v178_v49, 0.0  ;;  %v246_v9 = vadd.f32 %v202_v60, %v198_v59  ;;  %v127_v19 = vld [vmem:[#allocation6 + $0xd8] sm:$0xff] }
  0x44   :  { %275 = vst [vmem:[#allocation8] sm:$0xff] %v238_v58  ;;  %v243_v12 = vadd.f32 %v242_v1, %v217_v52  ;;  %v135_v13 = vmul.f32 %v103_v61, %v71_v50  ;;  %v139_v14 = vmul.f32 %v107_v62, %v75_v55  ;;  %v143_v15 = vmul.f32 %v111_v63, %v79_v56  ;;  %v99_v27 = vld [vmem:[#allocation3 + $0xf8] sm:$0xff] }
  0x45   :  { %v214_v16 = vmax.f32 %v182_v46, 0.0  ;;  %v247_v17 = vadd.f32 %v246_v9, %v206_v2  ;;  %v147_v20 = vmul.f32 %v115_v4, %v83_v57  ;;  %v151_v21 = vmul.f32 %v119_v5, %v87_v3  ;;  %v131_v28 = vld [vmem:[#allocation6 + $0xf8] sm:$0xff] }
  0x46   :  { %v244_v22 = vadd.f32 %v243_v12, %v221_v53  ;;  %v218_v23 = vmax.f32 %v186_v51, 0.0  ;;  %v155_v24 = vmul.f32 %v123_v11, %v91_v10  ;;  %v167_v25 = vsub.f32 1.0, %v135_v13 }
  0x47   :  { %v248_v26 = vadd.f32 %v247_v17, %v210_v8  ;;  %v171_v29 = vsub.f32 1.0, %v139_v14  ;;  %v175_v30 = vsub.f32 1.0, %v143_v15  ;;  %v179_v31 = vsub.f32 1.0, %v147_v20 }
  0x48   :  { %v245_v32 = vadd.f32 %v244_v22, %v225_v0  ;;  %v222_v33 = vmax.f32 %v190_v6, 0.0  ;;  %v159_v34 = vmul.f32 %v127_v19, %v95_v18  ;;  %v183_v36 = vsub.f32 1.0, %v151_v21 }
  0x49   :  { %v249_v35 = vadd.f32 %v248_v26, %v214_v16  ;;  %v199_v37 = vmax.f32 %v167_v25, 0.0  ;;  %v203_v38 = vmax.f32 %v171_v29, 0.0  ;;  %v226_v39 = vmax.f32 %v194_v7, 0.0 }
  0x4a   :  { %276 = vst [vmem:[#allocation8 + $0x8] sm:$0xff] %v245_v32  ;;  %v163_v40 = vmul.f32 %v131_v28, %v99_v27  ;;  %v207_v41 = vmax.f32 %v175_v30, 0.0  ;;  %v187_v43 = vsub.f32 1.0, %v155_v24  ;;  %v211_v44 = vmax.f32 %v179_v31, 0.0 }
  0x4b   :  { %v250_v42 = vadd.f32 %v249_v35, %v218_v23  ;;  %v253_v45 = vadd.f32 %v203_v38, %v199_v37  ;;  %v191_v48 = vsub.f32 1.0, %v159_v34  ;;  %v215_v49 = vmax.f32 %v183_v36, 0.0 }
  0x4c   :  { %v195_v53 = vsub.f32 1.0, %v163_v40  ;;  %v219_v54 = vmax.f32 %v187_v43, 0.0 }
  0x4d   :  { %v251_v47 = vadd.f32 %v250_v42, %v222_v33  ;;  %v254_v50 = vadd.f32 %v253_v45, %v207_v41  ;;  %v223_v56 = vmax.f32 %v191_v48, 0.0 }
  0x4e   :  { %v227_v58 = vmax.f32 %v195_v53, 0.0 }
  0x4f   :  { %v252_v52 = vadd.f32 %v251_v47, %v226_v39  ;;  %v255_v55 = vadd.f32 %v254_v50, %v211_v44 }
  0x51   :  { %277 = vst [vmem:[#allocation8 + $0x10] sm:$0xff] %v252_v52  ;;  %v256_v57 = vadd.f32 %v255_v55, %v215_v49 }
  0x53   :  { %v257_v46 = vadd.f32 %v256_v57, %v219_v54 }
  0x55   :  { %v258_v59 = vadd.f32 %v257_v46, %v223_v56 }
  0x57   :  { %v259_v60 = vadd.f32 %v258_v59, %v227_v58 }
  0x59   :  { %278 = vst [vmem:[#allocation8 + $0x18] sm:$0xff] %v259_v60 }
  0x5a   :  { %361 = shalt.err (!%p358_p6)
}
  0x5b   :  { %s362_s10 = scalar_lea.hbm %s448_s2, 512 }
  0x5c   :  { %p363_p7 = scmp.ne.s32.totalorder %s448_s2, %s362_s10  ;;  %p366_p8 = scmp.lt.u32.totalorder %s362_s10, %s448_s2 }
  0x5e   :  { %p368_p9 = pnand %p366_p8, %p363_p7 }
  0x60   :  { %371 = shalt.err (!%p368_p9)
}
  0x61   :  { %290 = dma.vmem_to_hbm [thread:$0]  %s285_s6, 512, %s448_s2, [#allocation5], %s379_s19, %s379_s19, %s380_s20  }
  0x62   :  { %376 = dma.done.wait [#allocation5], 512  }
  0x63   :  { %377 = vsyncadd [#allocation5], 4294966784 }
  0x64   :  { %294 = vsyncpa [#allocation4], 1 }
  0x65   :  { %295 = vsyncpa [#allocation7], 1 }
  0x66   :  { %296 = vsyncpa [#allocation5], 1 }

</bundles_post_ra>
